<compile_context>
chip_gen: v7x
topology: tpu7x:2x2x1
jax: 0.10.0
libtpu: 0.0.40
codegen_flags: <defaults>
</compile_context>

<pallas_src>
import functools
import math

import jax
import jax.numpy as jnp
from jax.experimental import pallas as pl
from jax.experimental.pallas import tpu as pltpu

# Module hyper-parameters (from the PyTorch script).
INPUT_SIZE = 400     # branch input dim
HIDDEN_SIZE = 40
INPUT_SIZE1 = 1      # trunk input dim
HIDDEN_SIZE1 = 40
P = 40               # latent basis dim (output of both nets)


def _ceil_to(a, m):
    return ((a + m - 1) // m) * m


def _vmem_capacity_bytes():
    """Physical VMEM of the attached TPU; conservative (v7x) fallback."""
    try:
        return int(pltpu.get_tpu_info().vmem_capacity_bytes)
    except Exception:
        return 64 * 1024 * 1024


# --------------------------- branch-net kernel ---------------------------

def _branch_kernel(x_ref, w1_ref, b1_ref, w2_ref, b2_ref, out_ref, *, use_bf16):
    x = x_ref[...]
    w1 = w1_ref[...]
    if use_bf16:
        x = x.astype(jnp.bfloat16)
        w1 = w1.astype(jnp.bfloat16)
    h = jnp.tanh(
        jnp.dot(x, w1, preferred_element_type=jnp.float32) + b1_ref[...])
    out_ref[...] = (
        jnp.dot(h, w2_ref[...], preferred_element_type=jnp.float32)
        + b2_ref[...])


def _branch_net(x_p, w1, b1, w2, b2, *, tm, use_bf16):
    Bp = x_p.shape[0]
    const = lambda i: (0, 0)
    return pl.pallas_call(
        functools.partial(_branch_kernel, use_bf16=use_bf16),
        out_shape=jax.ShapeDtypeStruct((Bp, P), jnp.float32),
        grid_spec=pltpu.PrefetchScalarGridSpec(
            num_scalar_prefetch=0,
            grid=(Bp // tm,),
            in_specs=[
                pl.BlockSpec((tm, INPUT_SIZE), lambda i: (i, 0)),   # x
                pl.BlockSpec((INPUT_SIZE, HIDDEN_SIZE), const),     # w1
                pl.BlockSpec((1, HIDDEN_SIZE), const),              # b1
                pl.BlockSpec((HIDDEN_SIZE, P), const),              # w2
                pl.BlockSpec((1, P), const),                        # b2
            ],
            out_specs=pl.BlockSpec((tm, P), lambda i: (i, 0)),
        ),
        compiler_params=pltpu.CompilerParams(
            dimension_semantics=("parallel",)),
    )(x_p, w1, b1, w2, b2)


# ------------------- trunk + final-contraction kernel -------------------

def _combine_kernel(branch_ref, xxT_ref, w3t_ref, b3t_ref, w4t_ref, b4t_ref,
                    out_ref, trunkT_sc, *, use_bf16):
    # grid = (j over N-tiles [outer, parallel], i over B-tiles [inner, arbitrary])
    i = pl.program_id(1)

    # Trunk depends only on the N-tile j: compute once (lane-dense, transposed)
    # when the inner B-tile index is 0, cache in VMEM scratch and reuse for i>0.
    @pl.when(i == 0)
    def _():
        # (40,1)*(1,tn)+(40,1) -> (40, tn); K==1 layer is a VPU broadcast, not MXU.
        hhT = jnp.tanh(w3t_ref[...] * xxT_ref[...] + b3t_ref[...])
        trunkT_sc[...] = (
            jnp.dot(w4t_ref[...], hhT, preferred_element_type=jnp.float32)
            + b4t_ref[...])                                          # (P, tn)

    # out[b, n] = sum_p branch[b, p] * trunk^T[p, n]  -- canonical (M,K)@(K,N).
    a = branch_ref[...]          # (tm, P)
    b = trunkT_sc[...]           # (P, tn)
    if use_bf16:
        a = a.astype(jnp.bfloat16)
        b = b.astype(jnp.bfloat16)
    out_ref[...] = jnp.dot(a, b, preferred_element_type=jnp.float32)


def deeponet_forward(x, xx, params, *, tm=None, tn=None, use_bf16=False):
    """x: (B, 400) f32, xx: (N, 1) f32 -> (B, N) f32."""
    B = x.shape[0]
    N = xx.shape[0]
    w1, b1, w2, b2, w3, b3, w4, b4 = params

    vmem = _vmem_capacity_bytes()

    # ---- row (branch-batch) tiling.
    Bp = _ceil_to(B, 8)
    if tm is None:
        tm = 512
    tm = _ceil_to(min(tm, Bp), 8)
    Bp = _ceil_to(Bp, tm)

    # ---- column (query) tiling, generation-aware VMEM budget.
    Np = _ceil_to(N, 128)
    if tn is None:
        budget = int(vmem * 0.45)   # pipelined buffers must fit scoped VMEM
        tn = 512
        for cand in (8192, 4096, 2048, 1024, 512, 256, 128):
            est_c = 8 * tm * cand + 320 * tm + 170 * cand + (1 << 16)
            if est_c <= budget:
                tn = cand
                break
    tn = _ceil_to(max(128, min(tn, Np)), 128)
    Np = _ceil_to(Np, tn)

    # Estimated per-step VMEM (out + branch in double-buffered, xx^T, trunk
    # scratch, small weights); raise the scoped limit so v5e's 16 MiB default
    # does not reject the larger tiles, staying well under physical VMEM.
    est = 8 * tm * tn + 320 * tm + 170 * tn + (1 << 16)
    vmem_limit = int(min(vmem * 0.6, max(32 * 1024 * 1024, int(est * 1.4))))

    # ---- pad inputs, transpose trunk params once in the wrapper (free).
    x_p = x if Bp == B else jnp.pad(x, ((0, Bp - B), (0, 0)))
    xxT = xx.T                                         # (1, N)
    xxT_p = xxT if Np == N else jnp.pad(xxT, ((0, 0), (0, Np - N)))
    w3t = w3.T                                         # (40, 1)
    b3t = b3.T                                         # (40, 1)
    w4t = w4.T                                         # (P, 40)
    b4t = b4.T                                         # (P, 1)

    # ---- branch net (tiny, run once for all Bp rows).
    branch = _branch_net(x_p, w1, b1, w2, b2, tm=tm, use_bf16=use_bf16)

    # ---- trunk + contraction, tiled (N outer/parallel, B inner/arbitrary).
    grid = (Np // tn, Bp // tm)
    const = lambda j, i: (0, 0)
    in_specs = [
        pl.BlockSpec((tm, P), lambda j, i: (i, 0)),            # branch
        pl.BlockSpec((1, tn), lambda j, i: (0, j)),            # xx^T
        pl.BlockSpec((HIDDEN_SIZE1, 1), const),                # w3^T
        pl.BlockSpec((HIDDEN_SIZE1, 1), const),                # b3^T
        pl.BlockSpec((P, HIDDEN_SIZE1), const),                # w4^T
        pl.BlockSpec((P, 1), const),                           # b4^T
    ]
    out_spec = pl.BlockSpec((tm, tn), lambda j, i: (i, j))

    flops = (2 * Np * HIDDEN_SIZE1                       # K==1 trunk layer
             + 2 * Np * HIDDEN_SIZE1 * P                 # trunk matmul
             + 2 * Bp * Np * P)                          # final contraction
    transcendentals = Np * HIDDEN_SIZE1
    bytes_accessed = 4 * (Bp * P + Np + Bp * Np
                          + 2 * HIDDEN_SIZE1 + P * HIDDEN_SIZE1 + P)

    out_p = pl.pallas_call(
        functools.partial(_combine_kernel, use_bf16=use_bf16),
        out_shape=jax.ShapeDtypeStruct((Bp, Np), jnp.float32),
        grid_spec=pltpu.PrefetchScalarGridSpec(
            num_scalar_prefetch=0,
            grid=grid,
            in_specs=in_specs,
            out_specs=out_spec,
            scratch_shapes=[pltpu.VMEM((P, tn), jnp.float32)],
        ),
        compiler_params=pltpu.CompilerParams(
            # N tiles are independent -> megacore-parallel on v7x; the B axis
            # stays sequential because the trunk scratch is filled at i == 0.
            dimension_semantics=("parallel", "arbitrary"),
            vmem_limit_bytes=vmem_limit),
        cost_estimate=pl.CostEstimate(
            flops=flops,
            transcendentals=transcendentals,
            bytes_accessed=bytes_accessed),
    )(branch, xxT_p, w3t, b3t, w4t, b4t)

    return out_p[:B, :N]


# ------------------------------- utilities -------------------------------

def init_linear(key, fan_in, fan_out):
    """PyTorch-style uniform(-1/sqrt(fan_in), 1/sqrt(fan_in)) init.

    Returns W with shape (fan_in, fan_out) (transposed vs. torch) and
    b with shape (1, fan_out).
    """
    kw, kb = jax.random.split(key)
    bound = 1.0 / math.sqrt(fan_in)
    w = jax.random.uniform(kw, (fan_in, fan_out), jnp.float32, -bound, bound)
    b = jax.random.uniform(kb, (1, fan_out), jnp.float32, -bound, bound)
    return w, b


def reference_forward(x, xx, params):
    """Pure-JAX reference for correctness checking."""
    w1, b1, w2, b2, w3, b3, w4, b4 = params
    h = jnp.tanh(x @ w1 + b1)
    branch = h @ w2 + b2
    hh = jnp.tanh(xx @ w3 + b3)
    trunk = hh @ w4 + b4
    return jnp.einsum('bi,ni->bn', branch, trunk)


def _check(x, xx, params, tag, *, atol=1e-3, rtol=1e-3, **kw):
    out = jax.block_until_ready(deeponet_forward(x, xx, params, **kw))
    ref = reference_forward(x, xx, params)
    assert out.shape == ref.shape, (tag, out.shape, ref.shape)
    max_err = jnp.max(jnp.abs(out - ref))
    assert jnp.allclose(out, ref, atol=atol, rtol=rtol), (
        f"{tag}: mismatch, max abs diff {max_err}")
    return out


if __name__ == "__main__":
    key = jax.random.PRNGKey(0)
    k_x, k_xx, k1, k2, k3, k4, k_x2, k_xx2 = jax.random.split(key, 8)

    w1, b1 = init_linear(k1, INPUT_SIZE, HIDDEN_SIZE)        # fc1
    w2, b2 = init_linear(k2, HIDDEN_SIZE, P)                 # fc2
    w3, b3 = init_linear(k3, INPUT_SIZE1, HIDDEN_SIZE1)      # fc3
    w4, b4 = init_linear(k4, HIDDEN_SIZE1, P)                # fc4
    params = (w1, b1, w2, b2, w3, b3, w4, b4)

    # Small case (module-scale toy shapes): B=2 functions, N=8 query points.
    x_small = jax.random.normal(k_x, (2, INPUT_SIZE), jnp.float32)
    xx_small = jax.random.normal(k_xx, (8, INPUT_SIZE1), jnp.float32)
    _check(x_small, xx_small, params, "small")

    # Larger case with forced small tiles to exercise the multi-tile grid
    # (trunk cached across B-tiles, branch reused across N-tiles).
    x_big = jax.random.normal(k_x2, (48, INPUT_SIZE), jnp.float32)
    xx_big = jax.random.normal(k_xx2, (1500, INPUT_SIZE1), jnp.float32)
    _check(x_big, xx_big, params, "big_multitile", tm=16, tn=512)

    # Same case with the generation-aware default (single large tile) path.
    _check(x_big, xx_big, params, "big_default")

    # Optional bf16 matmul-operand path (f32 accumulation) with a looser
    # tolerance, per the review's bf16-MXU suggestion.
    _check(x_big, xx_big, params, "big_bf16", tm=16, tn=512,
           use_bf16=True, atol=5e-2, rtol=5e-2)

    print("KERNEL_OK")
</pallas_src>

<mosaic_0001>
module attributes {stable_mosaic.version = 11 : i64} {
  func.func @_branch_kernel(%arg0: i32, %arg1: memref<8x400xf32, #tpu.memory_space<vmem>>, %arg2: memref<400x40xf32, #tpu.memory_space<vmem>>, %arg3: memref<1x40xf32, #tpu.memory_space<vmem>>, %arg4: memref<40x40xf32, #tpu.memory_space<vmem>>, %arg5: memref<1x40xf32, #tpu.memory_space<vmem>>, %arg6: memref<8x40xf32, #tpu.memory_space<vmem>>) attributes {dimension_semantics = [#tpu.dimension_semantics<parallel>], iteration_bounds = array<i64: 1>, scalar_prefetch = 0 : i64, scratch_operands = 0 : i64, tpu.core_type = #tpu.core_type<tc>, window_params = [{transform_indices = @transform_0, window_bounds = array<i64: 8, 400>}, {pipeline_mode = #tpu.pipeline_mode<synchronous>, transform_indices = @transform_1, window_bounds = array<i64: 400, 40>}, {pipeline_mode = #tpu.pipeline_mode<synchronous>, transform_indices = @transform_2, window_bounds = array<i64: 1, 40>}, {pipeline_mode = #tpu.pipeline_mode<synchronous>, transform_indices = @transform_3, window_bounds = array<i64: 40, 40>}, {pipeline_mode = #tpu.pipeline_mode<synchronous>, transform_indices = @transform_4, window_bounds = array<i64: 1, 40>}, {transform_indices = @transform_5, window_bounds = array<i64: 8, 40>}]} {
    %c0 = arith.constant 0 : index
    %c0_0 = arith.constant 0 : index
    %0 = vector.load %arg1[%c0, %c0_0] : memref<8x400xf32, #tpu.memory_space<vmem>>, vector<8x400xf32>
    %c0_1 = arith.constant 0 : index
    %c0_2 = arith.constant 0 : index
    %1 = vector.load %arg2[%c0_1, %c0_2] : memref<400x40xf32, #tpu.memory_space<vmem>>, vector<400x40xf32>
    %cst = arith.constant dense<0.000000e+00> : vector<8x40xf32>
    %2 = tpu.matmul %0, %1, %cst {dimension_numbers = #tpu.dot_dimension_numbers<[1], [0], [0], [1], [0, 0, 1, 1], [], []>} : vector<8x400xf32>, vector<400x40xf32>, vector<8x40xf32> -> vector<8x40xf32>
    %c0_3 = arith.constant 0 : index
    %c0_4 = arith.constant 0 : index
    %3 = vector.load %arg3[%c0_3, %c0_4] : memref<1x40xf32, #tpu.memory_space<vmem>>, vector<1x40xf32>
    %4 = vector.broadcast %3 : vector<1x40xf32> to vector<8x40xf32>
    %5 = arith.addf %2, %4 : vector<8x40xf32>
    %6 = math.tanh %5 : vector<8x40xf32>
    %c0_5 = arith.constant 0 : index
    %c0_6 = arith.constant 0 : index
    %7 = vector.load %arg4[%c0_5, %c0_6] : memref<40x40xf32, #tpu.memory_space<vmem>>, vector<40x40xf32>
    %cst_7 = arith.constant dense<0.000000e+00> : vector<8x40xf32>
    %8 = tpu.matmul %6, %7, %cst_7 {dimension_numbers = #tpu.dot_dimension_numbers<[1], [0], [0], [1], [0, 0, 1, 1], [], []>} : vector<8x40xf32>, vector<40x40xf32>, vector<8x40xf32> -> vector<8x40xf32>
    %c0_8 = arith.constant 0 : index
    %c0_9 = arith.constant 0 : index
    %9 = vector.load %arg5[%c0_8, %c0_9] : memref<1x40xf32, #tpu.memory_space<vmem>>, vector<1x40xf32>
    %10 = vector.broadcast %9 : vector<1x40xf32> to vector<8x40xf32>
    %11 = arith.addf %8, %10 : vector<8x40xf32>
    %c0_10 = arith.constant 0 : index
    %c0_11 = arith.constant 0 : index
    %12 = vector.load %arg6[%c0_10, %c0_11] : memref<8x40xf32, #tpu.memory_space<vmem>>, vector<8x40xf32>
    tpu.vector_store %arg6[%c0_10, %c0_11], %11 {strides = array<i32>} : memref<8x40xf32, #tpu.memory_space<vmem>>, vector<8x40xf32>,
    return
  }
  func.func @transform_0(%arg0: i32) -> (i32, i32) {
    %c0_i32 = arith.constant 0 : i32
    %c0_i32_0 = arith.constant 0 : i32
    return %arg0, %c0_i32 : i32, i32
  }
  func.func @transform_1(%arg0: i32) -> (i32, i32) {
    %c0_i32 = arith.constant 0 : i32
    %c0_i32_0 = arith.constant 0 : i32
    %c0_i32_1 = arith.constant 0 : i32
    return %c0_i32, %c0_i32_0 : i32, i32
  }
  func.func @transform_2(%arg0: i32) -> (i32, i32) {
    %c0_i32 = arith.constant 0 : i32
    %c0_i32_0 = arith.constant 0 : i32
    %c0_i32_1 = arith.constant 0 : i32
    return %c0_i32, %c0_i32_0 : i32, i32
  }
  func.func @transform_3(%arg0: i32) -> (i32, i32) {
    %c0_i32 = arith.constant 0 : i32
    %c0_i32_0 = arith.constant 0 : i32
    %c0_i32_1 = arith.constant 0 : i32
    return %c0_i32, %c0_i32_0 : i32, i32
  }
  func.func @transform_4(%arg0: i32) -> (i32, i32) {
    %c0_i32 = arith.constant 0 : i32
    %c0_i32_0 = arith.constant 0 : i32
    %c0_i32_1 = arith.constant 0 : i32
    return %c0_i32, %c0_i32_0 : i32, i32
  }
  func.func @transform_5(%arg0: i32) -> (i32, i32) {
    %c0_i32 = arith.constant 0 : i32
    %c0_i32_0 = arith.constant 0 : i32
    return %arg0, %c0_i32 : i32, i32
  }
}

</mosaic_0001>

<bundles_post_ra>
// kernel: tpu_custom_call.1
= control target key start
LH: loop header
LB: loop body
LE: loop exit
PB: predicated region body
PF: predicated region fallthrough
CT: control target
= control target key end

     0   :  { %v481_v4 = vmov 0.0|0.0   ;;  %vm82_vm0 = vcmask 130048   ;;  %s722_s0 = inlined_call_operand.vmem [shape: f32[8,400], index: 0, kind: input, shape index: {}]   ;;  %s723_s1 = inlined_call_operand.vmem [shape: f32[400,40], index: 1, kind: input, shape index: {}]   ;;  %s724_s2 = inlined_call_operand.vmem [shape: f32[1,40], index: 2, kind: input, shape index: {}]   ;;  %s725_s3 = inlined_call_operand.vmem [shape: f32[40,40], index: 3, kind: input, shape index: {}]   ;;  %s726_s4 = inlined_call_operand.vmem [shape: f32[1,40], index: 4, kind: input, shape index: {}]   ;;  %s727_s5 = inlined_call_operand.hbm [shape: f32[8,40], index: 5, kind: output, shape index: {}]  }
   0x1   :  { %v41_v0 = vld [vmem:[%s723_s1 + $0x80] sm:$0xff]  ;;  %v42_v1 = vld [vmem:[%s723_s1 + $0x88] sm:$0xff]  ;;  %418 = vmatprep.subr.bf16.mxu1 %v481_v4  ;;  %v43_v10 = vld [vmem:[%s723_s1 + $0x90] sm:$0xff] }
   0x2   :  { %v25_v2 = vld [vmem:[%s723_s1] sm:$0xff]  ;;  %v386_v3 = vpack.c.bf16 %v42_v1, %v41_v0  ;;  %v26_v5 = vld [vmem:[%s723_s1 + $0x8] sm:$0xff]  ;;  %v44_v11 = vld [vmem:[%s723_s1 + $0x98] sm:$0xff] }
   0x3   :  { %v57_v6 = vld [vmem:[%s723_s1 + $0x100] sm:$0xff]  ;;  %v58_v7 = vld [vmem:[%s723_s1 + $0x108] sm:$0xff]  ;;  %v388_v8 = vpack.c.bf16 %v26_v5, %v25_v2  ;;  %v27_v12 = vld [vmem:[%s723_s1 + $0x10] sm:$0xff]  ;;  %v390_v13 = vpack.c.bf16 %v44_v11, %v43_v10 }
   0x4   :  { %v419_v9 = vpack.c.bf16 %v58_v7, %v57_v6  ;;  %387 = vmatprep.subr.bf16.mxu0 %v386_v3  ;;  %v28_v14 = vld [vmem:[%s723_s1 + $0x18] sm:$0xff]  ;;  %v59_v15 = vld [vmem:[%s723_s1 + $0x110] sm:$0xff]  ;;  %v45_v19 = vld [vmem:[%s723_s1 + $0xa0] sm:$0xff] }
   0x5   :  { %v60_v16 = vld [vmem:[%s723_s1 + $0x118] sm:$0xff]  ;;  %389 = vmatpush3.bf16.msra.mxu0 %v388_v8  ;;  %v392_v17 = vpack.c.bf16 %v28_v14, %v27_v12  ;;  %v46_v20 = vld [vmem:[%s723_s1 + $0xa8] sm:$0xff]  ;;  %v29_v21 = vld [vmem:[%s723_s1 + $0x20] sm:$0xff] }
   0x6   :  { %420 = vmatpush1.bf16.msra.mxu1 %v419_v9  ;;  %v422_v18 = vpack.c.bf16 %v60_v16, %v59_v15  ;;  %391 = vmatprep.subr.bf16.mxu0 %v390_v13  ;;  %v394_v22 = vpack.c.bf16 %v46_v20, %v45_v19  ;;  %v30_v23 = vld [vmem:[%s723_s1 + $0x28] sm:$0xff]  ;;  %v61_v24 = vld [vmem:[%s723_s1 + $0x120] sm:$0xff]  ;;  %v47_v26 = vld [vmem:[%s723_s1 + $0xb0] sm:$0xff] }
   0x7   :  { %421 = vmatprep.subr.bf16.mxu1 %v481_v4  ;;  %v62_v25 = vld [vmem:[%s723_s1 + $0x128] sm:$0xff]  ;;  %v48_v27 = vld [vmem:[%s723_s1 + $0xb8] sm:$0xff]  ;;  %v396_v28 = vpack.c.bf16 %v30_v23, %v29_v21  ;;  %v31_v30 = vld [vmem:[%s723_s1 + $0x30] sm:$0xff] }
   0x8   :  { %v425_v29 = vpack.c.bf16 %v62_v25, %v61_v24  ;;  %v398_v31 = vpack.c.bf16 %v48_v27, %v47_v26  ;;  %v32_v32 = vld [vmem:[%s723_s1 + $0x38] sm:$0xff]  ;;  %v63_v33 = vld [vmem:[%s723_s1 + $0x130] sm:$0xff]  ;;  %v49_v35 = vld [vmem:[%s723_s1 + $0xc0] sm:$0xff] }
   0x9   :  { %393 = vmatpush3.bf16.msra.mxu0 %v392_v17  ;;  %v64_v34 = vld [vmem:[%s723_s1 + $0x138] sm:$0xff]  ;;  %v50_v36 = vld [vmem:[%s723_s1 + $0xc8] sm:$0xff]  ;;  %v400_v37 = vpack.c.bf16 %v32_v32, %v31_v30  ;;  %v33_v39 = vld [vmem:[%s723_s1 + $0x40] sm:$0xff] }
   0xa   :  { %423 = vmatpush1.bf16.msra.mxu1 %v422_v18  ;;  %395 = vmatprep.subr.bf16.mxu0 %v394_v22  ;;  %v428_v38 = vpack.c.bf16 %v64_v34, %v63_v33  ;;  %v402_v40 = vpack.c.bf16 %v50_v36, %v49_v35  ;;  %v34_v41 = vld [vmem:[%s723_s1 + $0x48] sm:$0xff]  ;;  %v65_v42 = vld [vmem:[%s723_s1 + $0x140] sm:$0xff]  ;;  %v51_v44 = vld [vmem:[%s723_s1 + $0xd0] sm:$0xff] }
   0xb   :  { %424 = vmatprep.subr.bf16.mxu1 %v481_v4  ;;  %v66_v43 = vld [vmem:[%s723_s1 + $0x148] sm:$0xff]  ;;  %v52_v45 = vld [vmem:[%s723_s1 + $0xd8] sm:$0xff]  ;;  %v404_v46 = vpack.c.bf16 %v34_v41, %v33_v39  ;;  %v35_v48 = vld [vmem:[%s723_s1 + $0x50] sm:$0xff] }
   0xc   :  { %v431_v47 = vpack.c.bf16 %v66_v43, %v65_v42  ;;  %v36_v49 = vld [vmem:[%s723_s1 + $0x58] sm:$0xff]  ;;  %v22_v50 = vld [vmem:[%s722_s0 + $0x8] sm:$0xff]  ;;  %v406_v51 = vpack.c.bf16 %v52_v45, %v51_v44  ;;  %v67_v52 = vld [vmem:[%s723_s1 + $0x150] sm:$0xff] }
   0xd   :  { %397 = vmatpush3.bf16.msra.mxu0 %v396_v28  ;;  %v68_v53 = vld [vmem:[%s723_s1 + $0x158] sm:$0xff]  ;;  %v53_v55 = vld [vmem:[%s723_s1 + $0xe0] sm:$0xff]  ;;  %v54_v56 = vld [vmem:[%s723_s1 + $0xe8] sm:$0xff]  ;;  %150 = vmatprep.mubr.f32.mxu0 %v22_v50 }
   0xe   :  { %426 = vmatpush1.bf16.msra.mxu1 %v425_v29  ;;  %399 = vmatprep.subr.bf16.mxu0 %v398_v31  ;;  %v24_v54 = vld [vmem:[%s722_s0 + $0x18] sm:$0xff] }
   0xf   :  { %427 = vmatprep.subr.bf16.mxu1 %v481_v4  ;;  %329 = vmatprep.mubr.msk.f32.mxu1 %vm82_vm0, %v24_v54 }
  0x11   :  { %401 = vmatpush3.bf16.msra.mxu0 %v400_v37 }
  0x12   :  { %429 = vmatpush1.bf16.msra.mxu1 %v428_v38  ;;  %403 = vmatprep.subr.bf16.mxu0 %v402_v40 }
  0x13   :  { %430 = vmatprep.subr.bf16.mxu1 %v481_v4 }
  0x14   :  { %10 = vsyncpa [#allocation3], 0  ;;  %v408_v57 = vpack.c.bf16 %v36_v49, %v35_v48  ;;  %v434_v58 = vpack.c.bf16 %v68_v53, %v67_v52  ;;  %v37_v59 = vld [vmem:[%s723_s1 + $0x60] sm:$0xff]  ;;  %v410_v60 = vpack.c.bf16 %v54_v56, %v53_v55  ;;  %v38_v61 = vld [vmem:[%s723_s1 + $0x68] sm:$0xff]  ;;  %vm482_vm1 = vmmov 0  }
  0x15   :  { %405 = vmatpush3.bf16.msra.mxu0 %v404_v46  ;;  %v69_v62 = vld [vmem:[%s723_s1 + $0x160] sm:$0xff]  ;;  %v70_v63 = vld [vmem:[%s723_s1 + $0x168] sm:$0xff]  ;;  %v55_v0 = vld [vmem:[%s723_s1 + $0xf0] sm:$0xff]  ;;  %v412_v2 = vpack.c.bf16 %v38_v61, %v37_v59  ;;  %v483_v22 = vmov 0.0   ;;  %vm239_vm2 = vcmask 326656  }
  0x16   :  { %432 = vmatpush1.bf16.msra.mxu1 %v431_v47  ;;  %407 = vmatprep.subr.bf16.mxu0 %v406_v51  ;;  %v56_v1 = vld [vmem:[%s723_s1 + $0xf8] sm:$0xff]  ;;  %v437_v3 = vpack.c.bf16 %v70_v63, %v69_v62  ;;  %v39_v5 = vld [vmem:[%s723_s1 + $0x70] sm:$0xff]  ;;  %v73_v12 = vld [vmem:[%s723_s1 + $0x180] sm:$0xff] }
  0x17   :  { %433 = vmatprep.subr.bf16.mxu1 %v481_v4  ;;  %v414_v6 = vpack.c.bf16 %v56_v1, %v55_v0  ;;  %v40_v7 = vld [vmem:[%s723_s1 + $0x78] sm:$0xff]  ;;  %v71_v8 = vld [vmem:[%s723_s1 + $0x170] sm:$0xff]  ;;  %v74_v13 = vld [vmem:[%s723_s1 + $0x188] sm:$0xff] }
  0x18   :  { %v72_v9 = vld [vmem:[%s723_s1 + $0x178] sm:$0xff]  ;;  %v416_v10 = vpack.c.bf16 %v40_v7, %v39_v5  ;;  %v21_v14 = vld [vmem:[%s722_s0] sm:$0xff]  ;;  %v443_v15 = vpack.c.bf16 %v74_v13, %v73_v12  ;;  %v23_v16 = vld [vmem:[%s722_s0 + $0x10] sm:$0xff] }
  0x19   :  { %409 = vmatpush3.bf16.msra.mxu0 %v408_v57  ;;  %v440_v11 = vpack.c.bf16 %v72_v9, %v71_v8  ;;  %v227_v17 = vld [vmem:[%s725_s3] sm:$0xff]  ;;  %v228_v18 = vld [vmem:[%s725_s3 + $0x8] sm:$0xff]  ;;  %v229_v20 = vld [vmem:[%s725_s3 + $0x10] sm:$0xff] }
  0x1a   :  { %435 = vmatpush1.bf16.msra.mxu1 %v434_v58  ;;  %411 = vmatprep.subr.bf16.mxu0 %v410_v60  ;;  %v446_v19 = vpack.c.bf16 %v228_v18, %v227_v17  ;;  %v230_v21 = vld [vmem:[%s725_s3 + $0x18] sm:$0xff]  ;;  %v231_v24 = vld [vmem:[%s725_s3 + $0x20] sm:$0xff]  ;;  %s484_s3 = smov [#allocation2]  }
  0x1b   :  { %436 = vmatprep.subr.bf16.mxu1 %v481_v4  ;;  %v449_v23 = vpack.c.bf16 %v230_v21, %v229_v20  ;;  %v328_v27 = vld [vmem:[%s724_s2] ss:$0 sm:$0xff]  ;;  %s320_s13 = sshll.u32 %s484_s3, 4  ;;  %s321_s13 = int_to_ptr.vmem [resolvable:$true] %s320_s13 }
  0x1c   :  { %v330_v33 = vld [vmem:[%s726_s4] ss:$0 sm:$0xff]  ;;  %s457_s2 = scalar_lea.vmem %s321_s13, 128  ;;  %p462_p1 = scmp.lt.s32.totalorder %s321_s13, %s321_s13 }
  0x1d   :  { %413 = vmatpush3.bf16.msra.mxu0 %v412_v2  ;;  %p458_p0 = scmp.ne.s32.totalorder %s321_s13, %s457_s2  ;;  %p463_p2 = scmp.lt.s32.totalorder %s457_s2, %s457_s2 }
  0x1e   :  { %438 = vmatpush1.bf16.msra.mxu1 %v437_v3  ;;  %415 = vmatprep.subr.bf16.mxu0 %v414_v6 }
  0x1f   :  { %439 = vmatprep.subr.bf16.mxu1 %v481_v4  ;;  %p464_p3 = por %p463_p2, %p462_p1 }
  0x21   :  { %417 = vmatpush3.bf16.msra.mxu0 %v416_v10  ;;  %p465_p4 = pnand %p464_p3, %p458_p0 }
  0x22   :  { %441 = vmatpush1.bf16.msra.mxu1 %v440_v11  ;;  %445 = vmatprep.subr.bf16.mxu0 %v481_v4 }
  0x23   :  { %442 = vmatprep.subr.bf16.mxu1 %v481_v4 }
  0x24   :  { %151 = vmatmul.mubr.f32.vlgmr.msra.gmra.mrb[0].mxu0 %v21_v14 }
  0x25   :  { %383 = vmatprep.mubr.msk.f32.mxu0 %vm482_vm1, %v483_v22  ;;  %447 = vmatpush3.bf16.msra.mxu0 %v446_v19 }
  0x26   :  { %444 = vmatpush1.bf16.msra.mxu1 %v443_v15  ;;  %448 = vmatprep.subr.bf16.mxu0 %v481_v4 }
  0x29   :  { %221 = vmatmul.mubr.f32.vlgmr.msra.gmra.mrb[0].mxu1 %v23_v16  ;;  %450 = vmatpush3.bf16.msra.mxu0 %v449_v23 }
  0x2a   :  { %381 = vmatprep.subr.mxu0 %v483_v22 }
  0x2d   :  { %382 = vmatpush3.msra.mxu0 %v231_v24 }
  0xf7   :  { %v364_v25 = vpop.f32.mrb[0].mxu0 }
  0xf8   :  { %v365_v26 = vpop.f32.mrb[1].mxu0 }
  0xf9   :  { %v366_v28 = vadd.f32 %v365_v26, %v364_v25 }
  0xfb   :  { %v153_v29 = vadd.f32 %v366_v28, %v328_v27 }
  0xfc   :  { %v222_v30 = vpop.f32.mrb[0].mxu1 }
  0xfd   :  { %v224_v31 = vpop.f32.mrb[1].mxu1  ;;  %v223_v32 = vadd.f32 %v222_v30, %v153_v29 }
  0xff   :  { %455 = vtanh.f32 %v223_v32 }
 0x109   :  { %v456_v4 = vpop.eup %455 }
 0x10a   :  { %384 = vmatmul.mubr.msk.f32.vlgmr.msra.gmra.mrb[2].mxu0 %vm239_vm2, %v456_v4 }
 0x1dd   :  { %v309_v34 = vpop.f32.mrb[2].mxu0 }
 0x1de   :  { %v310_v35 = vadd.f32 %v330_v33, %v309_v34  ;;  %v385_v36 = vpop.f32.mrb[3].mxu0 }
 0x1e0   :  { %313 = vst.msk [vmem:[#allocation2] sm:$0xff] %vm239_vm2, %v310_v35 }
 0x1e1   :  { %468 = shalt.err (!%p465_p4)
}
 0x1e2   :  { %s469_s16 = scalar_lea.hbm %s727_s5, 128 }
 0x1e3   :  { %p470_p5 = scmp.ne.s32.totalorder %s727_s5, %s469_s16  ;;  %p473_p6 = scmp.lt.u32.totalorder %s469_s16, %s727_s5 }
 0x1e5   :  { %p475_p7 = pnand %p473_p6, %p470_p5 }
 0x1e7   :  { %478 = shalt.err (!%p475_p7)
}
 0x1e8   :  { %323 = dma.vmem_to_hbm [thread:$0]  %s321_s13, 128, %s727_s5, [#allocation3]  }
 0x1e9   :  { %479 = dma.done.wait [#allocation3], 128  }
 0x1ea   :  { %480 = vsyncadd [#allocation3], 4294967168 }
 0x1eb   :  { %327 = vsyncpa [#allocation3], 1 }

</bundles_post_ra>
